<compile_context>
chip_gen: v6e
topology: v6e:2x2x1
jax: 0.10.0
libtpu: 0.0.40
codegen_flags: <defaults>
</compile_context>

<pallas_src>
import jax
import jax.numpy as jnp
from jax.experimental import pallas as pl
from jax.experimental.pallas import tpu as pltpu


def _ce_per_example_kernel(logits_ref, labels_ref, out_ref):
    """Per-example softmax cross-entropy for one batch tile.

    logits_ref: (TM, C)  float (widened to f32 in-kernel)
    labels_ref: (TM, 1)  int32 class indices
    out_ref:    (TM, 1)  float32 per-example CE loss
    """
    x = logits_ref[...].astype(jnp.float32)            # (TM, C)
    lbl = labels_ref[...]                                # (TM, 1) int32
    tm, c = x.shape

    # Numerically-stable logsumexp along the class (lane) axis.
    m = jnp.max(x, axis=-1, keepdims=True)               # (TM, 1)
    lse = m + jnp.log(jnp.sum(jnp.exp(x - m), axis=-1, keepdims=True))

    # picked = x[row, label[row]] via lane iota + select (no one-hot in HBM).
    col = jax.lax.broadcasted_iota(jnp.int32, (tm, c), 1)
    picked = jnp.sum(jnp.where(col == lbl, x, 0.0), axis=-1, keepdims=True)

    out_ref[...] = lse - picked                           # (TM, 1) f32


def _pick_batch_tile(batch, num_classes, itemsize):
    """Largest multiple-of-8 batch tile whose double-buffered footprint
    stays ~16 MiB (2 buffers x ~8 MiB), safe under a 32 MiB scoped-VMEM
    limit on all generations including v7x."""
    budget = 8 * 1024 * 1024                              # per in-flight tile
    row_bytes = num_classes * itemsize + 4                # logits row + int32 label
    tm = budget // max(row_bytes, 1)
    tm = max(8, min(1024, (tm // 8) * 8))
    if batch <= tm:
        # Single block covering the full batch dim (always a legal block shape).
        return batch
    return tm


def _ce_mean_loss(logits, label_idx):
    B, C = logits.shape
    tm = _pick_batch_tile(B, C, jnp.dtype(logits.dtype).itemsize)
    grid = (pl.cdiv(B, tm),)
    labels_2d = label_idx.reshape(B, 1).astype(jnp.int32)

    # NOTE: block last dims equal the full array dims (C and 1), which is a
    # legal TPU block shape even when C is not a multiple of 128 (demo C=32).
    # For production shapes keep C a multiple of 128 for lane-dense DMA.
    per_example = pl.pallas_call(
        _ce_per_example_kernel,
        out_shape=jax.ShapeDtypeStruct((B, 1), jnp.float32),
        grid=grid,
        in_specs=[
            pl.BlockSpec((tm, C), lambda i: (i, 0)),      # logits tile
            pl.BlockSpec((tm, 1), lambda i: (i, 0)),      # int32 labels tile
        ],
        out_specs=pl.BlockSpec((tm, 1), lambda i: (i, 0)),
        compiler_params=pltpu.CompilerParams(
            dimension_semantics=("parallel",),            # megacore-shardable
            vmem_limit_bytes=32 * 1024 * 1024,
        ),
    )(logits, labels_2d)

    # Tiny final reduction in the wrapper; divide by the TRUE batch size.
    return jnp.sum(per_example) / jnp.float32(B)


class BaseClassificationLoss:
    """JAX/Pallas mirror of the PyTorch BaseClassificationLoss module."""

    def __init__(self):
        self.losses = {}

    def __call__(self, logits, code_logits, labels, onehot=True):
        # `code_logits` is part of the interface but unused by the base CE
        # loss; deliberately NOT forwarded to the kernel (no wasted DMA).
        del code_logits
        B, C = logits.shape

        if onehot:
            # Hard one-hot assumed (see TODO above): recover the class index
            # instead of shipping the (B, C) one-hot into the kernel.
            label_idx = jnp.argmax(labels, axis=-1).astype(jnp.int32)
        else:
            label_idx = labels.astype(jnp.int32)

        loss = _ce_mean_loss(logits, label_idx)
        self.losses["ce"] = loss
        return loss


def _reference_ce(logits, labels_onehot):
    x = logits.astype(jnp.float32)
    lse = jax.nn.logsumexp(x, axis=-1)
    picked = jnp.sum(labels_onehot.astype(jnp.float32) * x, axis=-1)
    return jnp.mean(lse - picked)


if __name__ == "__main__":
    key = jax.random.PRNGKey(0)
    k1, k2, k3 = jax.random.split(key, 3)

    B, C, K = 8, 32, 16  # batch, num classes, code length
    logits = jax.random.normal(k1, (B, C), dtype=jnp.float32)
    code_logits = jax.random.normal(k2, (B, K), dtype=jnp.float32)
    label_idx = jax.random.randint(k3, (B,), 0, C)
    labels_onehot = jax.nn.one_hot(label_idx, C, dtype=jnp.float32)

    ref = jax.block_until_ready(_reference_ce(logits, labels_onehot))

    # one-hot label path
    loss_fn = BaseClassificationLoss()
    loss = jax.block_until_ready(
        loss_fn(logits, code_logits, labels_onehot, onehot=True))
    assert jnp.allclose(loss, ref, atol=1e-5, rtol=1e-5), (loss, ref)

    # integer label path (no one-hot materialization anywhere)
    loss2 = jax.block_until_ready(
        BaseClassificationLoss()(logits, code_logits, label_idx, onehot=False))
    assert jnp.allclose(loss2, ref, atol=1e-5, rtol=1e-5), (loss2, ref)

    print("KERNEL_OK")
</pallas_src>

<mosaic_0001>
module attributes {stable_mosaic.version = 11 : i64} {
  func.func @_ce_per_example_kernel(%arg0: i32, %arg1: memref<8x32xf32, #tpu.memory_space<vmem>>, %arg2: memref<8x1xi32, #tpu.memory_space<vmem>>, %arg3: memref<8x1xf32, #tpu.memory_space<vmem>>) attributes {dimension_semantics = [#tpu.dimension_semantics<parallel>], iteration_bounds = array<i64: 1>, scalar_prefetch = 0 : i64, scratch_operands = 0 : i64, tpu.core_type = #tpu.core_type<tc>, window_params = [{transform_indices = @transform_0, window_bounds = array<i64: 8, 32>}, {transform_indices = @transform_1, window_bounds = array<i64: 8, 1>}, {transform_indices = @transform_2, window_bounds = array<i64: 8, 1>}]} {
    %c0 = arith.constant 0 : index
    %c0_0 = arith.constant 0 : index
    %0 = vector.load %arg1[%c0, %c0_0] : memref<8x32xf32, #tpu.memory_space<vmem>>, vector<8x32xf32>
    %c0_1 = arith.constant 0 : index
    %c0_2 = arith.constant 0 : index
    %1 = vector.load %arg2[%c0_1, %c0_2] : memref<8x1xi32, #tpu.memory_space<vmem>>, vector<8x1xi32>
    %cst = arith.constant dense<0xFF800000> : vector<8xf32>
    %2 = vector.multi_reduction <maximumf>, %0, %cst [1] : vector<8x32xf32> to vector<8xf32>
    %3 = vector.shape_cast %2 : vector<8xf32> to vector<8x1xf32>
    %4 = vector.broadcast %3 : vector<8x1xf32> to vector<8x32xf32>
    %5 = arith.subf %0, %4 : vector<8x32xf32>
    %6 = math.exp %5 : vector<8x32xf32>
    %cst_3 = arith.constant dense<0.000000e+00> : vector<8xf32>
    %7 = vector.multi_reduction <add>, %6, %cst_3 [1] : vector<8x32xf32> to vector<8xf32>
    %8 = vector.shape_cast %7 : vector<8xf32> to vector<8x1xf32>
    %9 = math.log %8 : vector<8x1xf32>
    %10 = arith.addf %3, %9 : vector<8x1xf32>
    %11 = tpu.iota {dimensions = array<i32: 1>} : vector<8x32xi32>
    %12 = vector.broadcast %1 : vector<8x1xi32> to vector<8x32xi32>
    %13 = arith.cmpi eq, %11, %12 : vector<8x32xi32>
    %cst_4 = arith.constant 0.000000e+00 : f32
    %14 = vector.broadcast %cst_4 : f32 to vector<8x32xf32>
    %15 = arith.select %13, %0, %14 : vector<8x32xi1>, vector<8x32xf32>
    %cst_5 = arith.constant dense<0.000000e+00> : vector<8xf32>
    %16 = vector.multi_reduction <add>, %15, %cst_5 [1] : vector<8x32xf32> to vector<8xf32>
    %17 = vector.shape_cast %16 : vector<8xf32> to vector<8x1xf32>
    %18 = arith.subf %10, %17 : vector<8x1xf32>
    %c0_6 = arith.constant 0 : index
    %c0_7 = arith.constant 0 : index
    %19 = vector.load %arg3[%c0_6, %c0_7] : memref<8x1xf32, #tpu.memory_space<vmem>>, vector<8x1xf32>
    tpu.vector_store %arg3[%c0_6, %c0_7], %18 {strides = array<i32>} : memref<8x1xf32, #tpu.memory_space<vmem>>, vector<8x1xf32>,
    return
  }
  func.func @transform_0(%arg0: i32) -> (i32, i32) {
    %c0_i32 = arith.constant 0 : i32
    %c0_i32_0 = arith.constant 0 : i32
    return %arg0, %c0_i32 : i32, i32
  }
  func.func @transform_1(%arg0: i32) -> (i32, i32) {
    %c0_i32 = arith.constant 0 : i32
    %c0_i32_0 = arith.constant 0 : i32
    return %arg0, %c0_i32 : i32, i32
  }
  func.func @transform_2(%arg0: i32) -> (i32, i32) {
    %c0_i32 = arith.constant 0 : i32
    %c0_i32_0 = arith.constant 0 : i32
    return %arg0, %c0_i32 : i32, i32
  }
}

</mosaic_0001>

<bundles_post_ra>
// kernel: tpu_custom_call.1
= control target key start
LH: loop header
LB: loop body
LE: loop exit
PB: predicated region body
PF: predicated region fallthrough
CT: control target
= control target key end

     0   :  { %vm13_vm0 = vcmask 261120   ;;  %v49_v1 = vmov 0   ;;  %v26_v7 = vlaneseq  ;;  %vm37_vm2 = vcmask 7168   ;;  %s77_s0 = inlined_call_operand.vmem [shape: f32[8,32], index: 0, kind: input, shape index: {}]   ;;  %s78_s1 = inlined_call_operand.vmem [shape: s32[8,1], index: 1, kind: input, shape index: {}]   ;;  %s79_s2 = inlined_call_operand.vmem [shape: f32[8,1], index: 2, kind: output, shape index: {}]  }
   0x1   :  { %v11_v0 = vld [vmem:[%s77_s0] sm:$0xff]  ;;  %44 = vset.pattern.permute.xlu0 %v49_v1 }
   0x2   :  { %v14_v2 = vsel %vm13_vm0, %v11_v0, -inf  ;;  %v12_v3 = vld [vmem:[%s78_s1] sm:$0xff]  ;;  %v27_v8 = vand.u32 127, %v26_v7 }
   0x3   :  { %15 = vmax.xlane.f32.xlu0 %v14_v2 }
  0x19   :  { %29 = vperm.xlu0 %44, %v12_v3  }
  0x8c   :  { %v16_v4 = vpop.xlane.xlu0 %15 }
  0x8d   :  { %v17_v5 = vsub.f32 %v11_v0, %v16_v4 }
  0x8f   :  { %v18_v6 = vmul.f32 1.442695, %v17_v5 }
  0x91   :  { %45 = vpow2.f32 %v18_v6 }
  0x94   :  { %v30_v9 = vpop.permute.xlu0 %29 }
  0x95   :  { %vm31_vm1 = vcmp.eq.s32.totalorder %v27_v8, %v30_v9 }
  0x96   :  { %v32_v11 = vsel %vm31_vm1, %v11_v0, 0.0 }
  0x97   :  { %v33_v13 = vsel %vm13_vm0, %v32_v11, 0.0 }
  0x9e   :  { %v46_v10 = vpop.eup %45 }
  0x9f   :  { %v20_v12 = vsel %vm13_vm0, %v46_v10, 0.0 }
  0xa0   :  { %21 = vadd.xlane.f32.xlu1 %v20_v12 }
  0xa4   :  { %34 = vadd.xlane.f32.xlu1 %v33_v13 }
 0x129   :  { %v22_v14 = vpop.xlane.xlu1 %21 }
 0x12a   :  { %47 = vlog2.f32 %v22_v14 }
 0x12d   :  { %v35_v17 = vpop.xlane.xlu1 %34 }
 0x137   :  { %v48_v15 = vpop.eup %47 }
 0x138   :  { %v24_v16 = vmul.f32 0.6931472, %v48_v15 }
 0x13a   :  { %v25_v18 = vadd.f32 %v24_v16, %v16_v4 }
 0x13c   :  { %v36_v19 = vsub.f32 %v25_v18, %v35_v17 }
 0x13e   :  { %38 = vst.msk [vmem:[%s79_s2] sm:$0xff] %vm37_vm2, %v36_v19 }

</bundles_post_ra>
